<compile_context>
chip_gen: v7x
topology: tpu7x:2x2x1
jax: 0.10.0
libtpu: 0.0.40
codegen_flags: <defaults>
</compile_context>

<pallas_src>
import jax
import jax.numpy as jnp
from jax.experimental import pallas as pl
from jax.experimental.pallas import tpu as pltpu


def _u_update_kernel(x_ref, y_ref, u_ref, o_ref):
    # u^{k+1} = u^k + (x^{k+1} - y^{k+1})   -- pure VPU elementwise
    o_ref[...] = u_ref[...] + (x_ref[...] - y_ref[...])


def u_update_block(X, Y, U, *, block_bytes=2 << 20, alias_into_u=False):
    """ADMM u-update: U + (X - Y). All inputs same shape/dtype (NCHW)."""
    assert X.shape == Y.shape == U.shape
    assert X.dtype == Y.dtype == U.dtype
    orig_shape = X.shape
    dtype = X.dtype
    itemsize = jnp.dtype(dtype).itemsize

    total = 1
    for d in orig_shape:
        total *= d

    # --- lane-dense 2D slab (rows, lane): widest lane that divides total ---
    lane = None
    for cand in (1024, 512, 256, 128):
        if total % cand == 0:
            lane = cand
            break
    need_pad = lane is None
    if need_pad:
        # Rare ragged case (total not a multiple of 128): pad flattened inputs.
        # TODO(synk): handle the ragged tail with a masked store instead of padding.
        lane = 128
    rows = -(-total // lane)           # ceil
    padded_total = rows * lane

    # --- sublane tile multiple depends on dtype packing (f32:8, bf16:16, i8:32) ---
    sub = {4: 8, 2: 16, 1: 32}.get(itemsize, 8)

    # --- row tile so each operand block is ~block_bytes (default 2 MiB) ---
    target_rows = max(1, block_bytes // (lane * itemsize))
    if rows <= target_rows:
        row_tile = rows                # single block == full dim, always legal
    else:
        row_tile = max(sub, (target_rows // sub) * sub)

    def to2d(a):
        flat = a.reshape(-1)
        if need_pad:
            flat = jnp.pad(flat, (0, padded_total - total))
        return flat.reshape(rows, lane)

    x2, y2, u2 = to2d(X), to2d(Y), to2d(U)

    grid = (pl.cdiv(rows, row_tile),)
    spec = pl.BlockSpec((row_tile, lane), lambda i: (i, 0))

    out2 = pl.pallas_call(
        _u_update_kernel,
        out_shape=jax.ShapeDtypeStruct((rows, lane), dtype),
        grid_spec=pltpu.PrefetchScalarGridSpec(
            num_scalar_prefetch=0,
            grid=grid,
            in_specs=[spec, spec, spec],
            out_specs=spec,
        ),
        compiler_params=pltpu.CompilerParams(
            dimension_semantics=("parallel",),
            # 4 operands x 2 pipeline buffers x ~2 MiB ≈ 16 MiB; raise above the
            # v5e 16 MiB scoped default, well under physical VMEM on all chips.
            vmem_limit_bytes=32 << 20,
        ),
        # Optionally write the result over U's buffer (in-place ADMM update).
        input_output_aliases=({2: 0} if alias_into_u else {}),
    )(x2, y2, u2)

    if need_pad:
        out2 = out2.reshape(-1)[:total]
    return out2.reshape(orig_shape)


if __name__ == "__main__":
    key = jax.random.PRNGKey(0)

    # Primary test: small NCHW shape consistent with the module.
    kx, ky, ku = jax.random.split(key, 3)
    shape = (2, 4, 16, 16)  # NCHW
    X = jax.random.normal(kx, shape, dtype=jnp.float32)
    Y = jax.random.normal(ky, shape, dtype=jnp.float32)
    U = jax.random.normal(ku, shape, dtype=jnp.float32)

    out = u_update_block(X, Y, U)
    jax.block_until_ready(out)
    ref = U + (X - Y)
    assert out.shape == ref.shape
    assert jnp.allclose(out, ref, atol=1e-6, rtol=1e-6)

    # Multi-block / wide-slab path (lane-dense, larger grid).
    k2 = jax.random.split(key, 4)
    shape2 = (4, 8, 128, 128)
    X2 = jax.random.normal(k2[0], shape2, dtype=jnp.float32)
    Y2 = jax.random.normal(k2[1], shape2, dtype=jnp.float32)
    U2 = jax.random.normal(k2[2], shape2, dtype=jnp.float32)
    out2 = u_update_block(X2, Y2, U2)
    jax.block_until_ready(out2)
    assert jnp.allclose(out2, U2 + (X2 - Y2), atol=1e-6, rtol=1e-6)

    # Ragged fallback path (element count not a multiple of 128).
    k3 = jax.random.split(key, 7)
    shape3 = (2, 3, 5, 7)
    X3 = jax.random.normal(k3[0], shape3, dtype=jnp.float32)
    Y3 = jax.random.normal(k3[1], shape3, dtype=jnp.float32)
    U3 = jax.random.normal(k3[2], shape3, dtype=jnp.float32)
    out3 = u_update_block(X3, Y3, U3)
    jax.block_until_ready(out3)
    assert jnp.allclose(out3, U3 + (X3 - Y3), atol=1e-6, rtol=1e-6)

    # bf16 path (packed sublanes) + in-place aliasing into U.
    k4 = jax.random.split(key, 10)
    shape4 = (2, 4, 16, 32)
    X4 = jax.random.normal(k4[0], shape4, dtype=jnp.bfloat16)
    Y4 = jax.random.normal(k4[1], shape4, dtype=jnp.bfloat16)
    U4 = jax.random.normal(k4[2], shape4, dtype=jnp.bfloat16)
    out4 = u_update_block(X4, Y4, U4, alias_into_u=True)
    jax.block_until_ready(out4)
    ref4 = (U4.astype(jnp.float32) + (X4.astype(jnp.float32) - Y4.astype(jnp.float32)))
    assert jnp.allclose(out4.astype(jnp.float32), ref4, atol=3e-2, rtol=3e-2)

    print("KERNEL_OK")
</pallas_src>

<mosaic_0001>
module attributes {stable_mosaic.version = 11 : i64} {
  func.func @_u_update_kernel(%arg0: i32, %arg1: memref<2x1024xf32, #tpu.memory_space<vmem>>, %arg2: memref<2x1024xf32, #tpu.memory_space<vmem>>, %arg3: memref<2x1024xf32, #tpu.memory_space<vmem>>, %arg4: memref<2x1024xf32, #tpu.memory_space<vmem>>) attributes {dimension_semantics = [#tpu.dimension_semantics<parallel>], iteration_bounds = array<i64: 1>, scalar_prefetch = 0 : i64, scratch_operands = 0 : i64, tpu.core_type = #tpu.core_type<tc>, window_params = [{transform_indices = @transform_0, window_bounds = array<i64: 2, 1024>}, {transform_indices = @transform_1, window_bounds = array<i64: 2, 1024>}, {transform_indices = @transform_2, window_bounds = array<i64: 2, 1024>}, {transform_indices = @transform_3, window_bounds = array<i64: 2, 1024>}]} {
    %c0 = arith.constant 0 : index
    %c0_0 = arith.constant 0 : index
    %0 = vector.load %arg3[%c0, %c0_0] : memref<2x1024xf32, #tpu.memory_space<vmem>>, vector<2x1024xf32>
    %c0_1 = arith.constant 0 : index
    %c0_2 = arith.constant 0 : index
    %1 = vector.load %arg1[%c0_1, %c0_2] : memref<2x1024xf32, #tpu.memory_space<vmem>>, vector<2x1024xf32>
    %c0_3 = arith.constant 0 : index
    %c0_4 = arith.constant 0 : index
    %2 = vector.load %arg2[%c0_3, %c0_4] : memref<2x1024xf32, #tpu.memory_space<vmem>>, vector<2x1024xf32>
    %3 = arith.subf %1, %2 : vector<2x1024xf32>
    %4 = arith.addf %0, %3 : vector<2x1024xf32>
    %c0_5 = arith.constant 0 : index
    %c0_6 = arith.constant 0 : index
    %5 = vector.load %arg4[%c0_5, %c0_6] : memref<2x1024xf32, #tpu.memory_space<vmem>>, vector<2x1024xf32>
    tpu.vector_store %arg4[%c0_5, %c0_6], %4 {strides = array<i32>} : memref<2x1024xf32, #tpu.memory_space<vmem>>, vector<2x1024xf32>,
    return
  }
  func.func @transform_0(%arg0: i32) -> (i32, i32) {
    %c0_i32 = arith.constant 0 : i32
    %c0_i32_0 = arith.constant 0 : i32
    return %arg0, %c0_i32 : i32, i32
  }
  func.func @transform_1(%arg0: i32) -> (i32, i32) {
    %c0_i32 = arith.constant 0 : i32
    %c0_i32_0 = arith.constant 0 : i32
    return %arg0, %c0_i32 : i32, i32
  }
  func.func @transform_2(%arg0: i32) -> (i32, i32) {
    %c0_i32 = arith.constant 0 : i32
    %c0_i32_0 = arith.constant 0 : i32
    return %arg0, %c0_i32 : i32, i32
  }
  func.func @transform_3(%arg0: i32) -> (i32, i32) {
    %c0_i32 = arith.constant 0 : i32
    %c0_i32_0 = arith.constant 0 : i32
    return %arg0, %c0_i32 : i32, i32
  }
}

</mosaic_0001>

<bundles_post_ra>
// kernel: tpu_custom_call.1
= control target key start
LH: loop header
LB: loop body
LE: loop exit
PB: predicated region body
PF: predicated region fallthrough
CT: control target
= control target key end

     0   :  { %8 = vsyncpa [#allocation3], 0  ;;  %s248_s0 = inlined_call_operand.hbm [shape: f32[2,1024], index: 0, kind: input, shape index: {}]   ;;  %s249_s1 = inlined_call_operand.hbm [shape: f32[2,1024], index: 1, kind: input, shape index: {}]   ;;  %s250_s2 = inlined_call_operand.hbm [shape: f32[2,1024], index: 2, kind: input, shape index: {}]   ;;  %s251_s3 = inlined_call_operand.hbm [shape: f32[2,1024], index: 3, kind: output, shape index: {}]  }
   0x1   :  { %9 = vsyncpa [#allocation6], 0 }
   0x2   :  { %10 = vsyncpa [#allocation4], 0  ;;  %s176_s12 = smov [#allocation5]   ;;  %s177_s14 = smov [#allocation2]  }
   0x3   :  { %s27_s13 = sshll.u32 %s176_s12, 4  ;;  %s17_s15 = sshll.u32 %s177_s14, 4  ;;  %s28_s13 = int_to_ptr.vmem [resolvable:$true] %s27_s13  ;;  %s18_s15 = int_to_ptr.vmem [resolvable:$true] %s17_s15 }
   0x4   :  { %s82_s18 = scalar_lea.hbm %s249_s1, 256 }
   0x5   :  { %p83_p0 = scmp.ne.s32.totalorder %s249_s1, %s82_s18  ;;  %p86_p1 = scmp.lt.u32.totalorder %s82_s18, %s249_s1 }
   0x7   :  { %p88_p2 = pnand %p86_p1, %p83_p0 }
   0x9   :  { %91 = shalt.err (!%p88_p2)
}
   0xa   :  { %s92_s23 = scalar_lea.vmem %s28_s13, 256  ;;  %p97_p4 = scmp.lt.s32.totalorder %s28_s13, %s28_s13 }
   0xb   :  { %p93_p3 = scmp.ne.s32.totalorder %s28_s13, %s92_s23  ;;  %p98_p5 = scmp.lt.s32.totalorder %s92_s23, %s92_s23 }
   0xd   :  { %p99_p6 = por %p98_p5, %p97_p4 }
   0xf   :  { %p100_p7 = pnand %p99_p6, %p93_p3 }
  0x11   :  { %103 = shalt.err (!%p100_p7)
}
  0x12   :  { %30 = dma.hbm_to_vmem [thread:$0]  %s249_s1, 256, %s28_s13, [#allocation6]  }
  0x13   :  { %s104_s28 = scalar_lea.hbm %s248_s0, 256 }
  0x14   :  { %p105_p8 = scmp.ne.s32.totalorder %s248_s0, %s104_s28  ;;  %p108_p9 = scmp.lt.u32.totalorder %s104_s28, %s248_s0 }
  0x16   :  { %p110_p10 = pnand %p108_p9, %p105_p8 }
  0x18   :  { %113 = shalt.err (!%p110_p10)
}
  0x19   :  { %s114_s6 = scalar_lea.vmem %s18_s15, 256  ;;  %p119_p12 = scmp.lt.s32.totalorder %s18_s15, %s18_s15 }
  0x1a   :  { %p115_p11 = scmp.ne.s32.totalorder %s18_s15, %s114_s6  ;;  %p120_p13 = scmp.lt.s32.totalorder %s114_s6, %s114_s6 }
  0x1c   :  { %p121_p0 = por %p120_p13, %p119_p12 }
  0x1e   :  { %p122_p1 = pnand %p121_p0, %p115_p11 }
  0x20   :  { %125 = shalt.err (!%p122_p1)
}
  0x21   :  { %20 = dma.hbm_to_vmem [thread:$0]  %s248_s0, 256, %s18_s15, [#allocation3]  }
  0x22   :  { %s178_s8 = smov [#allocation7]   ;;  %s126_s12 = scalar_lea.hbm %s250_s2, 256 }
  0x23   :  { %s37_s9 = sshll.u32 %s178_s8, 4  ;;  %p127_p2 = scmp.ne.s32.totalorder %s250_s2, %s126_s12  ;;  %s38_s9 = int_to_ptr.vmem [resolvable:$true] %s37_s9 }
  0x24   :  { %p130_p3 = scmp.lt.u32.totalorder %s126_s12, %s250_s2 }
  0x26   :  { %p132_p4 = pnand %p130_p3, %p127_p2 }
  0x28   :  { %135 = shalt.err (!%p132_p4)
}
  0x29   :  { %s136_s18 = scalar_lea.vmem %s38_s9, 256  ;;  %p141_p6 = scmp.lt.s32.totalorder %s38_s9, %s38_s9 }
  0x2a   :  { %p137_p5 = scmp.ne.s32.totalorder %s38_s9, %s136_s18  ;;  %p142_p7 = scmp.lt.s32.totalorder %s136_s18, %s136_s18 }
  0x2c   :  { %p143_p8 = por %p142_p7, %p141_p6 }
  0x2e   :  { %p144_p9 = pnand %p143_p8, %p137_p5 }
  0x30   :  { %147 = shalt.err (!%p144_p9)
}
  0x31   :  { %40 = dma.hbm_to_vmem [thread:$0]  %s250_s2, 256, %s38_s9, [#allocation6]  }
  0x32   :  { %170 = dma.done.wait [#allocation3], 256  }
  0x33   :  { %171 = vsyncadd [#allocation3], 4294967040 }
  0x34   :  { %172 = dma.done.wait [#allocation6], 512  }
  0x35   :  { %173 = vsyncadd [#allocation6], 4294966784  ;;  %v50_v0 = vld [vmem:[#allocation7] sm:$0xff]  ;;  %v54_v2 = vld [vmem:[#allocation5] sm:$0xff]  ;;  %s179_s19 = smov [#allocation8]  }
  0x36   :  { %v52_v1 = vld [vmem:[#allocation2] sm:$0xff]  ;;  %v51_v4 = vld [vmem:[#allocation7 + $0x8] sm:$0xff]  ;;  %v55_v6 = vld [vmem:[#allocation5 + $0x8] sm:$0xff]  ;;  %s68_s20 = sshll.u32 %s179_s19, 4  ;;  %s69_s20 = int_to_ptr.vmem [resolvable:$true] %s68_s20 }
  0x37   :  { %v56_v3 = vsub.f32 %v52_v1, %v54_v2  ;;  %v53_v5 = vld [vmem:[#allocation2 + $0x8] sm:$0xff]  ;;  %s148_s2 = scalar_lea.vmem %s69_s20, 256  ;;  %p153_p11 = scmp.lt.s32.totalorder %s69_s20, %s69_s20 }
  0x38   :  { %v57_v7 = vsub.f32 %v53_v5, %v55_v6  ;;  %p149_p10 = scmp.ne.s32.totalorder %s69_s20, %s148_s2  ;;  %p154_p12 = scmp.lt.s32.totalorder %s148_s2, %s148_s2 }
  0x39   :  { %v58_v8 = vadd.f32 %v56_v3, %v50_v0 }
  0x3a   :  { %v59_v9 = vadd.f32 %v57_v7, %v51_v4  ;;  %p155_p13 = por %p154_p12, %p153_p11 }
  0x3b   :  { %60 = vst [vmem:[#allocation8] sm:$0xff] %v58_v8 }
  0x3c   :  { %61 = vst [vmem:[#allocation8 + $0x8] sm:$0xff] %v59_v9  ;;  %p156_p0 = pnand %p155_p13, %p149_p10 }
  0x3e   :  { %159 = shalt.err (!%p156_p0)
}
  0x3f   :  { %s160_s23 = scalar_lea.hbm %s251_s3, 256 }
  0x40   :  { %p161_p1 = scmp.ne.s32.totalorder %s251_s3, %s160_s23  ;;  %p164_p2 = scmp.lt.u32.totalorder %s160_s23, %s251_s3 }
  0x42   :  { %p166_p3 = pnand %p164_p2, %p161_p1 }
  0x44   :  { %169 = shalt.err (!%p166_p3)
}
  0x45   :  { %71 = dma.vmem_to_hbm [thread:$0]  %s69_s20, 256, %s251_s3, [#allocation4]  }
  0x46   :  { %174 = dma.done.wait [#allocation4], 256  }
  0x47   :  { %175 = vsyncadd [#allocation4], 4294967040 }
  0x48   :  { %75 = vsyncpa [#allocation3], 1 }
  0x49   :  { %76 = vsyncpa [#allocation6], 1 }
  0x4a   :  { %77 = vsyncpa [#allocation4], 1 }

</bundles_post_ra>
